<compile_context>
chip_gen: v7x
topology: tpu7x:2x2x1
jax: 0.10.0
libtpu: 0.0.40
codegen_flags: <defaults>
</compile_context>

<pallas_src>
import functools

import numpy as np
import jax
import jax.numpy as jnp
from jax import lax
from jax.experimental import pallas as pl
from jax.experimental.pallas import tpu as pltpu

NUM_CLASSES = 21
PARAM = NUM_CLASSES * 3  # 63


def _round_up(x, m):
    return (x + m - 1) // m * m


def _tn_cap():
    # v5e's MXU is 128 wide -> TN=128; v6e/v7x benefit from TN=256.
    try:
        kind = jax.devices()[0].device_kind.lower()
        if "v5e" in kind or "v5 lite" in kind or "v5lite" in kind:
            return 128
    except Exception:
        pass
    return 256


_TN_CAP = _tn_cap()
_TK_CAP = 1024
_X_TILE_BYTES = 4 << 20    # bf16 x-tile budget (per pipeline buffer)
_ACC_TILE_BYTES = 2 << 20  # f32 accumulator budget


def _pick_k_tile(K):
    """Largest multiple of 128 (<= cap) that divides K; else the full K dim."""
    t = (min(_TK_CAP, K) // 128) * 128
    while t >= 128:
        if K % t == 0:
            return t
        t -= 128
    return K  # no 128-multiple divisor: use the whole (un-padded) K dimension


def _pick_n_tile(Np):
    t = (min(_TN_CAP, Np) // 128) * 128
    while t >= 128:
        if Np % t == 0:
            return t
        t -= 128
    return Np  # Np < 128: full (lane-masked) output width


def _pick_m_tile(M, tk, tn):
    """Rows per block: big enough to amortize the ~0.35us/step overhead, small
    enough for VMEM (bf16 x-tile and f32 acc budgets), without creating
    excessive M padding."""
    if M <= 512:
        tm = _round_up(M, 8)
        return tm, tm
    tm = 512
    cand = 1024
    while (cand <= 4096
           and cand * tk * 2 <= _X_TILE_BYTES
           and cand * tn * 4 <= _ACC_TILE_BYTES
           and _round_up(M, cand) - M <= max(_round_up(M, tm) - M, M // 8)):
        tm = cand
        cand *= 2
    return tm, _round_up(M, tm)


# ----------------------------------------------------------------------------
# Pallas kernels
# ----------------------------------------------------------------------------
def _mm_bias_kernel(x_ref, w_ref, b_ref, o_ref, acc_ref, *, relu):
    """Tiled bf16 matmul, K-reduction in the grid, f32 acc, fused bias(+ReLU)."""
    k = pl.program_id(2)

    @pl.when(k == 0)
    def _():
        acc_ref[...] = jnp.zeros_like(acc_ref)

    acc_ref[...] += jnp.dot(x_ref[...], w_ref[...],
                            preferred_element_type=jnp.float32)

    @pl.when(k == pl.num_programs(2) - 1)
    def _():
        r = acc_ref[...] + b_ref[...]
        if relu:
            r = jnp.maximum(r, 0.0)
        o_ref[...] = r.astype(o_ref.dtype)


def matmul_bias(x, w, b, n_out, *, relu, out_dtype):
    """(M,K)bf16 @ (K,Np)bf16 + b(f32), optional ReLU -> (M,n_out) out_dtype."""
    M, K = x.shape
    Kw, Np = w.shape
    assert K == Kw
    tk = _pick_k_tile(K)
    tn = _pick_n_tile(Np)
    tm, Mp = _pick_m_tile(M, tk, tn)

    x = x.astype(jnp.bfloat16)
    if Mp != M:
        x = jnp.pad(x, ((0, Mp - M), (0, 0)))
    w = w.astype(jnp.bfloat16)
    b = b.astype(jnp.float32)

    out = pl.pallas_call(
        functools.partial(_mm_bias_kernel, relu=relu),
        out_shape=jax.ShapeDtypeStruct((Mp, Np), out_dtype),
        grid_spec=pltpu.PrefetchScalarGridSpec(
            num_scalar_prefetch=0,
            grid=(Mp // tm, Np // tn, K // tk),
            in_specs=[
                pl.BlockSpec((tm, tk), lambda i, j, k: (i, k)),
                pl.BlockSpec((tk, tn), lambda i, j, k: (k, j)),
                pl.BlockSpec((1, tn), lambda i, j, k: (0, j)),
            ],
            out_specs=pl.BlockSpec((tm, tn), lambda i, j, k: (i, j)),
            scratch_shapes=[pltpu.VMEM((tm, tn), jnp.float32)],
        ),
        compiler_params=pltpu.CompilerParams(
            dimension_semantics=("parallel", "parallel", "arbitrary")),
    )(x, w, b)
    if Mp != M or Np != n_out:
        out = out[:M, :n_out]
    return out


def _l2norm_kernel(x_ref, w_ref, o_ref):
    x = x_ref[...].astype(jnp.float32)
    ssq = jnp.sum(x * x, axis=-1, keepdims=True)
    inv = pl.reciprocal(jnp.sqrt(ssq) + 1e-10, approx=True)
    o_ref[...] = (x * inv * w_ref[...]).astype(o_ref.dtype)


def l2norm(x, weight, *, out_dtype=jnp.bfloat16):
    """SSD L2Norm: per-pixel L2-normalize over channels, per-channel scale."""
    N, H, W, C = x.shape
    M = N * H * W
    bm = 512 if M >= 512 else _round_up(M, 8)
    Mp = _round_up(M, bm)
    x2 = x.reshape(M, C)
    if Mp != M:
        x2 = jnp.pad(x2, ((0, Mp - M), (0, 0)))
    w2 = weight.reshape(1, C).astype(jnp.float32)
    out = pl.pallas_call(
        _l2norm_kernel,
        out_shape=jax.ShapeDtypeStruct((Mp, C), out_dtype),
        grid_spec=pltpu.PrefetchScalarGridSpec(
            num_scalar_prefetch=0,
            grid=(Mp // bm,),
            in_specs=[pl.BlockSpec((bm, C), lambda i: (i, 0)),
                      pl.BlockSpec((1, C), lambda i: (0, 0))],
            out_specs=pl.BlockSpec((bm, C), lambda i: (i, 0)),
        ),
        compiler_params=pltpu.CompilerParams(
            dimension_semantics=("parallel",)),
    )(x2, w2)
    if Mp != M:
        out = out[:M]
    return out.reshape(N, H, W, C)


# ----------------------------------------------------------------------------
# Convolution = im2col (glue, bf16) + Pallas matmul (hot path)
# ----------------------------------------------------------------------------
def conv2d(x, layer, *, k, stride=1, padding=0, dilation=1, relu=True,
           out_dtype=jnp.bfloat16, n_out=None):
    """x: (N,H,W,Cin) NHWC bf16.  layer: {'w': (k*k*Cin, Np) bf16, 'b': (1,Np)}."""
    N, H, W, C = x.shape
    if n_out is None:
        n_out = layer["w"].shape[1]
    keff = (k - 1) * dilation + 1
    Ho = (H + 2 * padding - keff) // stride + 1
    Wo = (W + 2 * padding - keff) // stride + 1
    if padding:
        x = jnp.pad(x, ((0, 0), (padding, padding), (padding, padding), (0, 0)))
    if k == 1 and stride == 1:
        patches = x
    else:
        cols = []
        for ky in range(k):
            for kx in range(k):
                y0 = ky * dilation
                x0 = kx * dilation
                cols.append(x[:, y0:y0 + (Ho - 1) * stride + 1:stride,
                              x0:x0 + (Wo - 1) * stride + 1:stride, :])
        patches = jnp.concatenate(cols, axis=-1)        # (N,Ho,Wo,k*k*Cin)
    out = matmul_bias(patches.reshape(N * Ho * Wo, k * k * C),
                      layer["w"], layer["b"], n_out,
                      relu=relu, out_dtype=out_dtype)
    return out.reshape(N, Ho, Wo, n_out)


# ----------------------------------------------------------------------------
# Pooling (plain-JAX glue, bf16)
# ----------------------------------------------------------------------------
def maxpool2x2(x, ceil_mode=False):
    N, H, W, C = x.shape
    if ceil_mode:
        Hp, Wp = -(-H // 2) * 2, -(-W // 2) * 2
        x = jnp.pad(x, ((0, 0), (0, Hp - H), (0, Wp - W), (0, 0)),
                    constant_values=-jnp.inf)
    else:
        Hp, Wp = (H // 2) * 2, (W // 2) * 2
        x = x[:, :Hp, :Wp, :]
    x = x.reshape(N, Hp // 2, 2, Wp // 2, 2, C)
    return x.max(axis=(2, 4))


def maxpool3x3_s1_p1(x):
    return lax.reduce_window(x, jnp.array(-jnp.inf, x.dtype), lax.max,
                             (1, 3, 3, 1), (1, 1, 1, 1),
                             [(0, 0), (1, 1), (1, 1), (0, 0)])


def avgpool3x3_s1(x):
    s = lax.reduce_window(x.astype(jnp.float32), jnp.array(0.0, jnp.float32),
                          lax.add, (1, 3, 3, 1), (1, 1, 1, 1),
                          [(0, 0), (0, 0), (0, 0), (0, 0)])
    return (s / 9.0).astype(x.dtype)


# ----------------------------------------------------------------------------
# Parameters (deterministic NumPy init; weights pre-cast/pre-padded bf16).
# NumPy keeps parameter construction off the TPU (no per-weight dispatch or
# compile), which keeps start-up time small.
# ----------------------------------------------------------------------------
def pack_conv_params(w_flat, b):
    """w_flat: (K, N) f32 numpy, b: (N,) f32 numpy -> bf16 weights padded on N
    to a lane-friendly width (only when N >= 128 and not a multiple of 128)."""
    K, N = w_flat.shape
    Np = N if (N < 128 or N % 128 == 0) else _round_up(N, 128)
    wp = np.pad(w_flat, ((0, 0), (0, Np - N)))
    bp = np.pad(b, (0, Np - N)).reshape(1, Np)
    return {"w": jnp.asarray(wp, dtype=jnp.bfloat16),
            "b": jnp.asarray(bp, dtype=jnp.float32)}


def make_conv_params(rng, cin, cout, k):
    scale = (2.0 / (cin * k * k)) ** 0.5
    w = rng.standard_normal((k * k * cin, cout), dtype=np.float32) * scale
    b = np.zeros((cout,), np.float32)
    return pack_conv_params(w, b)


def make_head_params(rng, cin, loc_c, conf_c):
    """Fused loc+conf 3x3 head: weights concatenated along the output axis."""
    scale = (2.0 / (cin * 9)) ** 0.5
    wl = rng.standard_normal((9 * cin, loc_c), dtype=np.float32) * scale
    wc = rng.standard_normal((9 * cin, conf_c), dtype=np.float32) * scale
    w = np.concatenate([wl, wc], axis=1)
    b = np.zeros((loc_c + conf_c,), np.float32)
    return pack_conv_params(w, b)


def build_params(seed=0):
    rng = np.random.default_rng(seed)
    p = {}
    base_cfg = [(3, 64), (64, 64), (64, 128), (128, 128), (128, 256),
                (256, 256), (256, 256), (256, 512), (512, 512), (512, 512)]
    p["base"] = [make_conv_params(rng, ci, co, 3) for ci, co in base_cfg]
    p["l2norm_w"] = jnp.full((512,), 20.0, jnp.float32)
    p["f2"] = [make_conv_params(rng, 512, 512, 3),
               make_conv_params(rng, 512, 512, 3),
               make_conv_params(rng, 512, 512, 3),
               make_conv_params(rng, 512, 1024, 3),
               make_conv_params(rng, 1024, 1024, 1)]
    p["f3"] = [make_conv_params(rng, 1024, 256, 1),
               make_conv_params(rng, 256, 512, 3)]
    p["f4"] = [make_conv_params(rng, 512, 128, 1),
               make_conv_params(rng, 128, 256, 3)]
    p["f5"] = [make_conv_params(rng, 256, 128, 1),
               make_conv_params(rng, 128, 256, 3)]
    p["h4_3"] = make_head_params(rng, 512, 12, PARAM)
    p["hfc7"] = make_head_params(rng, 1024, 24, 2 * PARAM)
    p["h6_2"] = make_head_params(rng, 512, 24, 2 * PARAM)
    p["h7_2"] = make_head_params(rng, 256, 24, 2 * PARAM)
    p["h8_2"] = make_head_params(rng, 256, 24, 2 * PARAM)
    p["hp6"] = make_head_params(rng, 256, 24, 2 * PARAM)
    return p


# ----------------------------------------------------------------------------
# Forward pass (train phase: returns loc, conf; priors added by caller)
# ----------------------------------------------------------------------------
def _head(x, pr, loc_c, conf_c):
    """Fused loc/conf head (one matmul), f32 outputs, NHWC-flattened."""
    o = conv2d(x, pr, k=3, padding=1, relu=False, out_dtype=jnp.float32,
               n_out=loc_c + conf_c)
    n = o.shape[0]
    return o[..., :loc_c].reshape(n, -1), o[..., loc_c:].reshape(n, -1)


def ssd_forward(params, x_nchw):
    x = jnp.transpose(x_nchw, (0, 2, 3, 1)).astype(jnp.bfloat16)  # NCHW->NHWC

    def conv(x, pr, k, stride=1, padding=0, dilation=1):
        return conv2d(x, pr, k=k, stride=stride, padding=padding,
                      dilation=dilation, relu=True, out_dtype=jnp.bfloat16)

    # --- VGG base: [64,64,M,128,128,M,256,256,256,C,512,512,512] ---
    b = params["base"]
    x = conv(x, b[0], 3, padding=1)
    x = conv(x, b[1], 3, padding=1)
    x = maxpool2x2(x)
    x = conv(x, b[2], 3, padding=1)
    x = conv(x, b[3], 3, padding=1)
    x = maxpool2x2(x)
    x = conv(x, b[4], 3, padding=1)
    x = conv(x, b[5], 3, padding=1)
    x = conv(x, b[6], 3, padding=1)
    x = maxpool2x2(x, ceil_mode=True)
    x = conv(x, b[7], 3, padding=1)
    x = conv(x, b[8], 3, padding=1)
    x = conv(x, b[9], 3, padding=1)

    # --- multibox source 1: L2Norm(conv4_3) ---
    y = l2norm(x, params["l2norm_w"])
    b1 = _head(y, params["h4_3"], 12, PARAM)

    # --- features2 (fc6/fc7 as dilated convs) ---
    f2 = params["f2"]
    x = maxpool2x2(x)
    x = conv(x, f2[0], 3, padding=1)
    x = conv(x, f2[1], 3, padding=1)
    x = conv(x, f2[2], 3, padding=1)
    x = maxpool3x3_s1_p1(x)
    x = conv(x, f2[3], 3, padding=6, dilation=6)
    x = conv(x, f2[4], 1)
    b2 = _head(x, params["hfc7"], 24, 2 * PARAM)

    # --- features3 ---
    f3 = params["f3"]
    x = conv(x, f3[0], 1)
    x = conv(x, f3[1], 3, stride=2, padding=1)
    b3 = _head(x, params["h6_2"], 24, 2 * PARAM)

    # --- features4 ---
    f4 = params["f4"]
    x = conv(x, f4[0], 1)
    x = conv(x, f4[1], 3, stride=2, padding=1)
    b4 = _head(x, params["h7_2"], 24, 2 * PARAM)

    # --- features5 ---
    f5 = params["f5"]
    x = conv(x, f5[0], 1)
    x = conv(x, f5[1], 3, stride=2, padding=1)
    b5 = _head(x, params["h8_2"], 24, 2 * PARAM)

    # --- pool6 ---
    x = avgpool3x3_s1(x)
    b6 = _head(x, params["hp6"], 24, 2 * PARAM)

    loc = jnp.concatenate([b1[0], b2[0], b3[0], b4[0], b5[0], b6[0]], axis=1)
    conf = jnp.concatenate([b1[1], b2[1], b3[1], b4[1], b5[1], b6[1]], axis=1)
    loc = loc.reshape(loc.shape[0], -1, 4)
    conf = conf.reshape(conf.shape[0], -1, NUM_CLASSES)
    return loc, conf


if __name__ == "__main__":
    key = jax.random.PRNGKey(0)
    xkey, prior_key = jax.random.split(key)

    # Quick sanity check: Pallas bf16 conv vs lax reference on a tiny shape.
    srng = np.random.default_rng(1)
    tx = jnp.asarray(srng.standard_normal((1, 5, 5, 3), dtype=np.float32))
    tw = srng.standard_normal((3, 3, 3, 4), dtype=np.float32) * 0.1
    tb = np.arange(4, dtype=np.float32) * 0.1
    ref = lax.conv_general_dilated(
        tx.astype(jnp.bfloat16), jnp.asarray(tw, jnp.bfloat16), (1, 1),
        [(1, 1), (1, 1)], dimension_numbers=("NHWC", "HWIO", "NHWC"),
        preferred_element_type=jnp.float32) + jnp.asarray(tb)
    tlayer = pack_conv_params(tw.reshape(27, 4), tb)
    got = conv2d(tx.astype(jnp.bfloat16), tlayer, k=3, padding=1, relu=False,
                 out_dtype=jnp.float32)
    assert jnp.allclose(ref, got, atol=2e-2, rtol=2e-2), "Pallas conv mismatch"

    params = build_params(seed=0)

    # Smallest spatial size for which the forward is valid:
    # pool6 (3x3 avg-pool, stride 1, no padding) needs a >=3x3 feature map,
    # which requires input spatial >= 268 (original model uses 300).
    B, S = 1, 268
    x = jax.random.normal(xkey, (B, 3, S, S), jnp.float32)  # NCHW like PyTorch

    fwd = jax.jit(ssd_forward)
    loc, conf = fwd(params, x)
    jax.block_until_ready((loc, conf))

    num_priors = loc.shape[1]
    assert loc.shape == (B, num_priors, 4)
    assert conf.shape == (B, num_priors, NUM_CLASSES)
    assert bool(jnp.all(jnp.isfinite(loc))) and bool(jnp.all(jnp.isfinite(conf)))

    # TODO(synk): PriorBox (v1 config) default-box generation and the test-phase
    # Detect/NMS module are not part of the provided code; use a deterministic
    # placeholder prior tensor of the correct shape (train-phase output tuple).
    priors = jax.random.uniform(prior_key, (num_priors, 4), jnp.float32)
    output = (loc, conf, priors)
    jax.block_until_ready(output)
    print("KERNEL_OK")
</pallas_src>

<mosaic_0001>
module attributes {stable_mosaic.version = 11 : i64} {
  func.func @_mm_bias_kernel(%arg0: i32, %arg1: i32, %arg2: i32, %arg3: memref<32x27xbf16, #tpu.memory_space<vmem>>, %arg4: memref<27x4xbf16, #tpu.memory_space<vmem>>, %arg5: memref<1x4xf32, #tpu.memory_space<vmem>>, %arg6: memref<32x4xf32, #tpu.memory_space<vmem>>, %arg7: memref<32x4xf32, #tpu.memory_space<vmem>>) attributes {dimension_semantics = [#tpu.dimension_semantics<parallel>, #tpu.dimension_semantics<parallel>, #tpu.dimension_semantics<arbitrary>], iteration_bounds = array<i64: 1, 1, 1>, scalar_prefetch = 0 : i64, scratch_operands = 1 : i64, tpu.core_type = #tpu.core_type<tc>, window_params = [{transform_indices = @transform_0, window_bounds = array<i64: 32, 27>}, {transform_indices = @transform_1, window_bounds = array<i64: 27, 4>}, {transform_indices = @transform_2, window_bounds = array<i64: 1, 4>}, {transform_indices = @transform_3, window_bounds = array<i64: 32, 4>}]} {
    %c0_i32 = arith.constant 0 : i32
    %0 = arith.cmpi eq, %arg2, %c0_i32 : i32
    %1 = arith.extui %0 : i1 to i32
    %c0_i32_0 = arith.constant 0 : i32
    %2 = arith.cmpi ne, %1, %c0_i32_0 : i32
    scf.if %2 {
      %cst_10 = arith.constant 0.000000e+00 : f32
      %12 = vector.broadcast %cst_10 : f32 to vector<32x4xf32>
      %c0_11 = arith.constant 0 : index
      %c0_12 = arith.constant 0 : index
      %13 = vector.load %arg7[%c0_11, %c0_12] : memref<32x4xf32, #tpu.memory_space<vmem>>, vector<32x4xf32>
      tpu.vector_store %arg7[%c0_11, %c0_12], %12 {strides = array<i32>} : memref<32x4xf32, #tpu.memory_space<vmem>>, vector<32x4xf32>,
    } else {
    }
    %c0 = arith.constant 0 : index
    %c0_1 = arith.constant 0 : index
    %3 = vector.load %arg7[%c0, %c0_1] : memref<32x4xf32, #tpu.memory_space<vmem>>, vector<32x4xf32>
    %c0_2 = arith.constant 0 : index
    %c0_3 = arith.constant 0 : index
    %4 = vector.load %arg3[%c0_2, %c0_3] : memref<32x27xbf16, #tpu.memory_space<vmem>>, vector<32x27xbf16>
    %c0_4 = arith.constant 0 : index
    %c0_5 = arith.constant 0 : index
    %5 = vector.load %arg4[%c0_4, %c0_5] : memref<27x4xbf16, #tpu.memory_space<vmem>>, vector<27x4xbf16>
    %cst = arith.constant dense<0.000000e+00> : vector<32x4xf32>
    %6 = tpu.matmul %4, %5, %cst {dimension_numbers = #tpu.dot_dimension_numbers<[1], [0], [0], [1], [0, 0, 1, 1], [], []>} : vector<32x27xbf16>, vector<27x4xbf16>, vector<32x4xf32> -> vector<32x4xf32>
    %7 = arith.addf %3, %6 : vector<32x4xf32>
    %c0_6 = arith.constant 0 : index
    %c0_7 = arith.constant 0 : index
    %8 = vector.load %arg7[%c0_6, %c0_7] : memref<32x4xf32, #tpu.memory_space<vmem>>, vector<32x4xf32>
    tpu.vector_store %arg7[%c0_6, %c0_7], %7 {strides = array<i32>} : memref<32x4xf32, #tpu.memory_space<vmem>>, vector<32x4xf32>,
    %c0_i32_8 = arith.constant 0 : i32
    %9 = arith.cmpi eq, %arg2, %c0_i32_8 : i32
    %10 = arith.extui %9 : i1 to i32
    %c0_i32_9 = arith.constant 0 : i32
    %11 = arith.cmpi ne, %10, %c0_i32_9 : i32
    scf.if %11 {
      %c0_10 = arith.constant 0 : index
      %c0_11 = arith.constant 0 : index
      %12 = vector.load %arg7[%c0_10, %c0_11] : memref<32x4xf32, #tpu.memory_space<vmem>>, vector<32x4xf32>
      %c0_12 = arith.constant 0 : index
      %c0_13 = arith.constant 0 : index
      %13 = vector.load %arg5[%c0_12, %c0_13] : memref<1x4xf32, #tpu.memory_space<vmem>>, vector<1x4xf32>
      %14 = vector.broadcast %13 : vector<1x4xf32> to vector<32x4xf32>
      %15 = arith.addf %12, %14 : vector<32x4xf32>
      %c0_14 = arith.constant 0 : index
      %c0_15 = arith.constant 0 : index
      %16 = vector.load %arg6[%c0_14, %c0_15] : memref<32x4xf32, #tpu.memory_space<vmem>>, vector<32x4xf32>
      tpu.vector_store %arg6[%c0_14, %c0_15], %15 {strides = array<i32>} : memref<32x4xf32, #tpu.memory_space<vmem>>, vector<32x4xf32>,
    } else {
    }
    return
  }
  func.func @transform_0(%arg0: i32, %arg1: i32, %arg2: i32) -> (i32, i32) {
    %c0_i32 = arith.constant 0 : i32
    return %arg0, %arg2 : i32, i32
  }
  func.func @transform_1(%arg0: i32, %arg1: i32, %arg2: i32) -> (i32, i32) {
    %c0_i32 = arith.constant 0 : i32
    return %arg2, %arg1 : i32, i32
  }
  func.func @transform_2(%arg0: i32, %arg1: i32, %arg2: i32) -> (i32, i32) {
    %c0_i32 = arith.constant 0 : i32
    %c0_i32_0 = arith.constant 0 : i32
    return %c0_i32, %arg1 : i32, i32
  }
  func.func @transform_3(%arg0: i32, %arg1: i32, %arg2: i32) -> (i32, i32) {
    %c0_i32 = arith.constant 0 : i32
    return %arg0, %arg1 : i32, i32
  }
}

</mosaic_0001>

<bundles_post_ra>
// kernel: tpu_custom_call.1
= control target key start
LH: loop header
LB: loop body
LE: loop exit
PB: predicated region body
PF: predicated region fallthrough
CT: control target
= control target key end

     0   :  { %vm64_vm0 = vcmask 1044480   ;;  %vm65_vm1 = vcmask 1045504   ;;  %vm57_vm2 = vcmask 220160   ;;  %v180_v1 = vmov 65535   ;;  %s243_s1 = inlined_call_operand.vmem [shape: bf16[27,4], index: 1, kind: input, shape index: {}]   ;;  %s244_s0 = inlined_call_operand.vmem [shape: bf16[32,27], index: 0, kind: input, shape index: {}]   ;;  %s245_s2 = inlined_call_operand.vmem [shape: f32[1,4], index: 2, kind: input, shape index: {}]   ;;  %s246_s3 = inlined_call_operand.vmem [shape: f32[32,4], index: 3, kind: output, shape index: {}]  }
   0x1   :  { %v176_v0 = vld [vmem:[%s243_s1] sm:$0xff]   ;;  %v66_v2 = vsel %vm64_vm0, 4294967295, %v180_v1  ;;  %v177_v3 = vld [vmem:[%s243_s1 + $0x8] sm:$0x3f]   ;;  %vm19_vm3 = vcmask 31744   ;;  %v181_v7 = vmov 0.0  }
   0x2   :  { %166 = vmatprep.subr.bf16.mxu0 %v176_v0  ;;  %v67_v4 = vsel %vm65_vm1, %v66_v2, 0  ;;  %v178_v5 = vld [vmem:[%s244_s0] sm:$0xff]   ;;  %22 = vst.msk [vmem:[#allocation2 + $0x10] sm:$0xff] %vm19_vm3, %v181_v7  ;;  %20 = vst.msk [vmem:[#allocation2] sm:$0xff] %vm19_vm3, %v181_v7  ;;  %v179_v8 = vld [vmem:[%s244_s0 + $0x8] sm:$0xff]  }
   0x3   :  { %167 = vmatpush3.bf16.msra.mxu0 %v176_v0  ;;  %v69_v6 = vand.u32 %v177_v3, %v67_v4  ;;  %170 = vmatprep.mubr.msk.bf16.mxu0 %vm57_vm2, %v178_v5  ;;  %21 = vst.msk [vmem:[#allocation2 + $0x8] sm:$0xff] %vm19_vm3, %v181_v7  ;;  %23 = vst.msk [vmem:[#allocation2 + $0x18] sm:$0xff] %vm19_vm3, %v181_v7  ;;  %v161_v21 = vld [vmem:[%s245_s2] ss:$0 sm:$0xff] }
   0x5   :  { %168 = vmatprep.subr.bf16.mxu0 %v69_v6 }
   0x7   :  { %169 = vmatpush3.bf16.msra.mxu0 %v69_v6 }
   0x9   :  { %v26_v9 = vld [vmem:[#allocation2 + $0x10] sm:$0xff]  ;;  %v24_v10 = vld [vmem:[#allocation2] sm:$0xff] }
   0xa   :  { %171 = vmatmul.mubr.msk.bf16.vlgmr.msra.gmra.mrb[0].mxu0 %vm57_vm2, %v179_v8  ;;  %v27_v12 = vld [vmem:[#allocation2 + $0x18] sm:$0xff]  ;;  %v25_v15 = vld [vmem:[#allocation2 + $0x8] sm:$0xff] }
  0xdd   :  { %v172_v11 = vpop.f32.mrb[0].mxu0 }
  0xde   :  { %v122_v13 = vadd.f32 %v172_v11, %v26_v9  ;;  %v105_v14 = vpop.f32.mrb[1].mxu0 }
  0xdf   :  { %v120_v16 = vadd.f32 %v105_v14, %v24_v10  ;;  %v173_v17 = vpop.f32.mrb[2].mxu0 }
  0xe0   :  { %127 = vst.msk [vmem:[#allocation2 + $0x10] sm:$0xff] %vm19_vm3, %v122_v13  ;;  %v123_v18 = vadd.f32 %v173_v17, %v27_v12  ;;  %v108_v19 = vpop.f32.mrb[3].mxu0 }
  0xe1   :  { %125 = vst.msk [vmem:[#allocation2] sm:$0xff] %vm19_vm3, %v120_v16  ;;  %v121_v20 = vadd.f32 %v108_v19, %v25_v15 }
  0xe2   :  { %128 = vst.msk [vmem:[#allocation2 + $0x18] sm:$0xff] %vm19_vm3, %v123_v18 }
  0xe3   :  { %126 = vst.msk [vmem:[#allocation2 + $0x8] sm:$0xff] %vm19_vm3, %v121_v20 }
  0xe7   :  { %v134_v22 = vld [vmem:[#allocation2 + $0x10] sm:$0xff] }
  0xe8   :  { %v145_v23 = vadd.f32 %v161_v21, %v134_v22  ;;  %v132_v24 = vld [vmem:[#allocation2] sm:$0xff] }
  0xe9   :  { %v143_v25 = vadd.f32 %v161_v21, %v132_v24  ;;  %v135_v26 = vld [vmem:[#allocation2 + $0x18] sm:$0xff] }
  0xea   :  { %149 = vst.msk [vmem:[%s246_s3 + $0x10] sm:$0xff] %vm19_vm3, %v145_v23  ;;  %v146_v27 = vadd.f32 %v161_v21, %v135_v26  ;;  %v133_v28 = vld [vmem:[#allocation2 + $0x8] sm:$0xff] }
  0xeb   :  { %147 = vst.msk [vmem:[%s246_s3] sm:$0xff] %vm19_vm3, %v143_v25  ;;  %v144_v29 = vadd.f32 %v161_v21, %v133_v28 }
  0xec   :  { %150 = vst.msk [vmem:[%s246_s3 + $0x18] sm:$0xff] %vm19_vm3, %v146_v27 }
  0xed   :  { %148 = vst.msk [vmem:[%s246_s3 + $0x8] sm:$0xff] %vm19_vm3, %v144_v29 }

</bundles_post_ra>
